<compile_context>
chip_gen: v6e
topology: v6e:2x2x1
jax: 0.10.0
libtpu: 0.0.40
codegen_flags: <defaults>
</compile_context>

<pallas_src>
import functools

import jax
import jax.numpy as jnp
from jax import lax
from jax.experimental import pallas as pl
from jax.experimental.pallas import tpu as pltpu


def _cdiv(a, b):
    return (a + b - 1) // b


def _round_up(a, b):
    return _cdiv(a, b) * b


def _softad_kernel(logits_ref, tgt_ref, out_ref, acc_ref, *,
                   theta, inv_sigma, tile_n, tiles_per_split, n_total):
    s = pl.program_id(0)          # TensorCore split (parallel axis)
    t = pl.program_id(1)          # batch tile within the split (reduction axis)

    @pl.when(t == 0)
    def _():
        acc_ref[...] = jnp.zeros_like(acc_ref)

    logits = logits_ref[...].astype(jnp.float32)                # (tile_n, C)
    tgt = tgt_ref[...]                                          # (tile_n, 1) int32

    # Per-row cross entropy with reduction='none': logsumexp(logits) - logits[target].
    m = jnp.max(logits, axis=-1, keepdims=True)                 # (tile_n, 1)
    lse = m + jnp.log(jnp.sum(jnp.exp(logits - m), axis=-1, keepdims=True))
    lane = lax.broadcasted_iota(jnp.int32, logits.shape, 1)
    tgt_logit = jnp.sum(jnp.where(lane == tgt, logits, 0.0), axis=-1, keepdims=True)
    ce = lse - tgt_logit                                        # (tile_n, 1)

    # rho((loss - theta)/sigma) with rho(x) = sqrt(1 + x^2) - 1; divide folded to multiply.
    z = (ce - theta) * inv_sigma
    rho = jnp.sqrt(1.0 + z * z) - 1.0

    # Mask out padded batch rows so the wrapper-side mean over the true N stays correct.
    row0 = (s * tiles_per_split + t) * tile_n
    row = row0 + lax.broadcasted_iota(jnp.int32, rho.shape, 0)
    rho = jnp.where(row < n_total, rho, 0.0)

    # Elementwise VMEM accumulator: no per-step cross-lane reduce / scalar round-trip.
    acc_ref[...] += rho

    @pl.when(t == tiles_per_split - 1)
    def _():
        split_sum = jnp.sum(acc_ref[...])                       # one reduce per split
        out_ref[...] = jnp.full(out_ref.shape, split_sum, dtype=jnp.float32)


def loss_softad(logits, targets, *, theta, sigma, eta, tile_n=None, num_splits=None):
    """SoftAD forward (CrossEntropy base loss).

    logits:  (N, C) float (streamed in native dtype, cast to f32 in-kernel).
    targets: (N,) integer class indices.  Returns scalar float32.
    """
    N, C = logits.shape
    sigma = float(sigma) + 1e-12          # matches the PyTorch module
    inv_sigma = 1.0 / sigma
    itemsize = jnp.dtype(logits.dtype).itemsize

    if tile_n is None:
        # Double-buffered logits tile budget kept well under v5e's 16 MiB default scoped
        # VMEM (also leaves headroom for per-row temps on v6e/v7x, which default to 32 MiB).
        budget_bytes = 4 * 1024 * 1024
        tmax = budget_bytes // max(1, 2 * C * itemsize)
        tile_n = max(8, min(1024, (tmax // 8) * 8))
    tile_n = max(8, (tile_n // 8) * 8)
    tile_n = min(tile_n, _round_up(N, 8))          # tiny problems -> single grid step

    num_tiles = _cdiv(N, tile_n)
    if num_splits is None:
        # Leading parallel axis so v7x's two TensorCores both stream HBM; no-op elsewhere.
        num_splits = 2 if num_tiles >= 2 else 1
    tiles_per_split = _cdiv(num_tiles, num_splits)
    n_pad = num_splits * tiles_per_split * tile_n

    tgt = targets.astype(jnp.int32)
    if n_pad != N:
        logits = jnp.pad(logits, ((0, n_pad - N), (0, 0)))
        tgt = jnp.pad(tgt, ((0, n_pad - N),))
    tgt2d = tgt.reshape(n_pad, 1)

    kernel = functools.partial(
        _softad_kernel,
        theta=float(theta), inv_sigma=float(inv_sigma),
        tile_n=tile_n, tiles_per_split=tiles_per_split, n_total=N)

    cost = pl.CostEstimate(
        flops=8 * n_pad * C,
        transcendentals=n_pad * C + 2 * n_pad,
        bytes_accessed=n_pad * C * itemsize + n_pad * 4 + num_splits * 8 * 128 * 4)

    out = pl.pallas_call(
        kernel,
        out_shape=jax.ShapeDtypeStruct((num_splits * 8, 128), jnp.float32),
        grid_spec=pltpu.PrefetchScalarGridSpec(
            num_scalar_prefetch=0,
            grid=(num_splits, tiles_per_split),
            in_specs=[
                pl.BlockSpec((tile_n, C), lambda s, t: (s * tiles_per_split + t, 0)),
                pl.BlockSpec((tile_n, 1), lambda s, t: (s * tiles_per_split + t, 0)),
            ],
            out_specs=pl.BlockSpec((8, 128), lambda s, t: (s, 0)),
            scratch_shapes=[pltpu.VMEM((tile_n, 1), jnp.float32)],
        ),
        compiler_params=pltpu.CompilerParams(
            dimension_semantics=("parallel", "arbitrary")),
        cost_estimate=cost,
    )(logits, tgt2d)

    per_split = out[0::8, 0]                       # (num_splits,) raw rho sums
    dispersion = (sigma * sigma) * (jnp.sum(per_split) / jnp.float32(N))
    return jnp.float32(eta * theta) + dispersion


def loss_softad_ref(logits, targets, *, theta, sigma, eta):
    sigma = sigma + 1e-12
    logits = logits.astype(jnp.float32)
    lse = jax.scipy.special.logsumexp(logits, axis=-1)
    tgt_logit = jnp.take_along_axis(logits, targets[:, None].astype(jnp.int32), axis=-1)[:, 0]
    ce = lse - tgt_logit
    rho = jnp.sqrt(1.0 + ((ce - theta) / sigma) ** 2) - 1.0
    return eta * theta + sigma ** 2 * jnp.mean(rho)


if __name__ == "__main__":
    key = jax.random.PRNGKey(0)
    theta, sigma, eta = 0.5, 1.0, 0.1

    # Small case (N=64, C=32): tile_n clamps to 64 -> single grid step.
    k1, k2 = jax.random.split(key)
    N, C = 64, 32
    logits = jax.random.normal(k1, (N, C), dtype=jnp.float32)
    targets = jax.random.randint(k2, (N,), 0, C, dtype=jnp.int32)
    out = jax.block_until_ready(loss_softad(logits, targets, theta=theta, sigma=sigma, eta=eta))
    ref = loss_softad_ref(logits, targets, theta=theta, sigma=sigma, eta=eta)
    assert jnp.allclose(out, ref, rtol=1e-5, atol=1e-5), (out, ref)

    # Exercise bf16 streaming, remainder masking, multi-tile accumulation and the 2-way split.
    k3, k4 = jax.random.split(k2)
    N2, C2 = 200, 32
    logits2 = jax.random.normal(k3, (N2, C2), dtype=jnp.bfloat16)
    targets2 = jax.random.randint(k4, (N2,), 0, C2, dtype=jnp.int32)
    out2 = jax.block_until_ready(
        loss_softad(logits2, targets2, theta=theta, sigma=sigma, eta=eta, tile_n=64))
    ref2 = loss_softad_ref(logits2, targets2, theta=theta, sigma=sigma, eta=eta)
    assert jnp.allclose(out2, ref2, rtol=1e-4, atol=1e-4), (out2, ref2)

    print("KERNEL_OK")
</pallas_src>

<mosaic_0001>
module attributes {stable_mosaic.version = 11 : i64} {
  func.func @_softad_kernel(%arg0: i32, %arg1: i32, %arg2: memref<64x32xf32, #tpu.memory_space<vmem>>, %arg3: memref<64x1xi32, #tpu.memory_space<vmem>>, %arg4: memref<8x128xf32, #tpu.memory_space<vmem>>, %arg5: memref<64x1xf32, #tpu.memory_space<vmem>>) attributes {dimension_semantics = [#tpu.dimension_semantics<parallel>, #tpu.dimension_semantics<arbitrary>], iteration_bounds = array<i64: 1, 1>, scalar_prefetch = 0 : i64, scratch_operands = 1 : i64, tpu.core_type = #tpu.core_type<tc>, window_params = [{transform_indices = @transform_0, window_bounds = array<i64: 64, 32>}, {transform_indices = @transform_1, window_bounds = array<i64: 64, 1>}, {transform_indices = @transform_2, window_bounds = array<i64: 8, 128>}]} {
    %c0_i32 = arith.constant 0 : i32
    %0 = arith.cmpi eq, %arg1, %c0_i32 : i32
    %1 = arith.extui %0 : i1 to i32
    %c0_i32_0 = arith.constant 0 : i32
    %2 = arith.cmpi ne, %1, %c0_i32_0 : i32
    scf.if %2 {
      %cst_19 = arith.constant 0.000000e+00 : f32
      %48 = vector.broadcast %cst_19 : f32 to vector<64x1xf32>
      %c0_20 = arith.constant 0 : index
      %c0_21 = arith.constant 0 : index
      %49 = vector.load %arg5[%c0_20, %c0_21] : memref<64x1xf32, #tpu.memory_space<vmem>>, vector<64x1xf32>
      tpu.vector_store %arg5[%c0_20, %c0_21], %48 {strides = array<i32>} : memref<64x1xf32, #tpu.memory_space<vmem>>, vector<64x1xf32>,
    } else {
    }
    %c0 = arith.constant 0 : index
    %c0_1 = arith.constant 0 : index
    %3 = vector.load %arg2[%c0, %c0_1] : memref<64x32xf32, #tpu.memory_space<vmem>>, vector<64x32xf32>
    %c0_2 = arith.constant 0 : index
    %c0_3 = arith.constant 0 : index
    %4 = vector.load %arg3[%c0_2, %c0_3] : memref<64x1xi32, #tpu.memory_space<vmem>>, vector<64x1xi32>
    %cst = arith.constant dense<0xFF800000> : vector<64xf32>
    %5 = vector.multi_reduction <maximumf>, %3, %cst [1] : vector<64x32xf32> to vector<64xf32>
    %6 = vector.shape_cast %5 : vector<64xf32> to vector<64x1xf32>
    %7 = vector.broadcast %6 : vector<64x1xf32> to vector<64x32xf32>
    %8 = arith.subf %3, %7 : vector<64x32xf32>
    %9 = math.exp %8 : vector<64x32xf32>
    %cst_4 = arith.constant dense<0.000000e+00> : vector<64xf32>
    %10 = vector.multi_reduction <add>, %9, %cst_4 [1] : vector<64x32xf32> to vector<64xf32>
    %11 = vector.shape_cast %10 : vector<64xf32> to vector<64x1xf32>
    %12 = math.log %11 : vector<64x1xf32>
    %13 = arith.addf %6, %12 : vector<64x1xf32>
    %14 = tpu.iota {dimensions = array<i32: 1>} : vector<64x32xi32>
    %15 = vector.broadcast %4 : vector<64x1xi32> to vector<64x32xi32>
    %16 = arith.cmpi eq, %14, %15 : vector<64x32xi32>
    %cst_5 = arith.constant 0.000000e+00 : f32
    %17 = vector.broadcast %cst_5 : f32 to vector<64x32xf32>
    %18 = arith.select %16, %3, %17 : vector<64x32xi1>, vector<64x32xf32>
    %cst_6 = arith.constant dense<0.000000e+00> : vector<64xf32>
    %19 = vector.multi_reduction <add>, %18, %cst_6 [1] : vector<64x32xf32> to vector<64xf32>
    %20 = vector.shape_cast %19 : vector<64xf32> to vector<64x1xf32>
    %21 = arith.subf %13, %20 : vector<64x1xf32>
    %cst_7 = arith.constant 5.000000e-01 : f32
    %22 = vector.broadcast %cst_7 : f32 to vector<64x1xf32>
    %23 = arith.subf %21, %22 : vector<64x1xf32>
    %cst_8 = arith.constant 1.000000e+00 : f32
    %24 = vector.broadcast %cst_8 : f32 to vector<64x1xf32>
    %25 = arith.mulf %23, %24 : vector<64x1xf32>
    %26 = arith.mulf %25, %25 : vector<64x1xf32>
    %cst_9 = arith.constant 1.000000e+00 : f32
    %27 = vector.broadcast %cst_9 : f32 to vector<64x1xf32>
    %28 = arith.addf %27, %26 : vector<64x1xf32>
    %29 = math.sqrt %28 : vector<64x1xf32>
    %cst_10 = arith.constant 1.000000e+00 : f32
    %30 = vector.broadcast %cst_10 : f32 to vector<64x1xf32>
    %31 = arith.subf %29, %30 : vector<64x1xf32>
    %c1_i32 = arith.constant 1 : i32
    %32 = arith.muli %arg0, %c1_i32 : i32
    %33 = arith.addi %32, %arg1 : i32
    %c64_i32 = arith.constant 64 : i32
    %34 = arith.muli %33, %c64_i32 : i32
    %35 = tpu.iota {dimensions = array<i32: 0>} : vector<64x1xi32>
    %36 = vector.broadcast %34 : i32 to vector<64x1xi32>
    %37 = arith.addi %36, %35 : vector<64x1xi32>
    %c64_i32_11 = arith.constant 64 : i32
    %38 = vector.broadcast %c64_i32_11 : i32 to vector<64x1xi32>
    %39 = arith.cmpi slt, %37, %38 : vector<64x1xi32>
    %cst_12 = arith.constant 0.000000e+00 : f32
    %40 = vector.broadcast %cst_12 : f32 to vector<64x1xf32>
    %41 = arith.select %39, %31, %40 : vector<64x1xi1>, vector<64x1xf32>
    %c0_13 = arith.constant 0 : index
    %c0_14 = arith.constant 0 : index
    %42 = vector.load %arg5[%c0_13, %c0_14] : memref<64x1xf32, #tpu.memory_space<vmem>>, vector<64x1xf32>
    %43 = arith.addf %42, %41 : vector<64x1xf32>
    %c0_15 = arith.constant 0 : index
    %c0_16 = arith.constant 0 : index
    %44 = vector.load %arg5[%c0_15, %c0_16] : memref<64x1xf32, #tpu.memory_space<vmem>>, vector<64x1xf32>
    tpu.vector_store %arg5[%c0_15, %c0_16], %43 {strides = array<i32>} : memref<64x1xf32, #tpu.memory_space<vmem>>, vector<64x1xf32>,
    %c0_i32_17 = arith.constant 0 : i32
    %45 = arith.cmpi eq, %arg1, %c0_i32_17 : i32
    %46 = arith.extui %45 : i1 to i32
    %c0_i32_18 = arith.constant 0 : i32
    %47 = arith.cmpi ne, %46, %c0_i32_18 : i32
    scf.if %47 {
      %c0_19 = arith.constant 0 : index
      %c0_20 = arith.constant 0 : index
      %48 = vector.load %arg5[%c0_19, %c0_20] : memref<64x1xf32, #tpu.memory_space<vmem>>, vector<64x1xf32>
      %49 = vector.shape_cast %48 : vector<64x1xf32> to vector<1x64x1xf32>
      %cst_21 = arith.constant dense<0.000000e+00> : vector<1xf32>
      %50 = vector.multi_reduction <add>, %49, %cst_21 [1, 2] : vector<1x64x1xf32> to vector<1xf32>
      %51 = vector.shape_cast %50 : vector<1xf32> to vector<1x1x1xf32>
      %52 = vector.extract %51[0, 0, 0] : f32 from vector<1x1x1xf32>
      %53 = vector.broadcast %52 : f32 to vector<8x128xf32>
      %c0_22 = arith.constant 0 : index
      %c0_23 = arith.constant 0 : index
      %54 = vector.load %arg4[%c0_22, %c0_23] : memref<8x128xf32, #tpu.memory_space<vmem>>, vector<8x128xf32>
      tpu.vector_store %arg4[%c0_22, %c0_23], %53 {strides = array<i32>} : memref<8x128xf32, #tpu.memory_space<vmem>>, vector<8x128xf32>,
    } else {
    }
    return
  }
  func.func @transform_0(%arg0: i32, %arg1: i32) -> (i32, i32) {
    %c1_i32 = arith.constant 1 : i32
    %0 = arith.muli %arg0, %c1_i32 : i32
    %1 = arith.addi %0, %arg1 : i32
    %c0_i32 = arith.constant 0 : i32
    %c0_i32_0 = arith.constant 0 : i32
    return %1, %c0_i32 : i32, i32
  }
  func.func @transform_1(%arg0: i32, %arg1: i32) -> (i32, i32) {
    %c1_i32 = arith.constant 1 : i32
    %0 = arith.muli %arg0, %c1_i32 : i32
    %1 = arith.addi %0, %arg1 : i32
    %c0_i32 = arith.constant 0 : i32
    %c0_i32_0 = arith.constant 0 : i32
    return %1, %c0_i32 : i32, i32
  }
  func.func @transform_2(%arg0: i32, %arg1: i32) -> (i32, i32) {
    %c0_i32 = arith.constant 0 : i32
    %c0_i32_0 = arith.constant 0 : i32
    return %arg0, %c0_i32 : i32, i32
  }
}

</mosaic_0001>

<bundles_post_ra>
// kernel: tpu_custom_call.1
= control target key start
LH: loop header
LB: loop body
LE: loop exit
PB: predicated region body
PF: predicated region fallthrough
CT: control target
= control target key end

     0   :  { %vm85_vm0 = vcmask 261120   ;;  %v561_v6 = vmov 0   ;;  %s791_s0 = inlined_call_operand.vmem [shape: f32[64,32], index: 0, kind: input, shape index: {}]   ;;  %s792_s1 = inlined_call_operand.vmem [shape: s32[64,1], index: 1, kind: input, shape index: {}]   ;;  %s793_s2 = inlined_call_operand.hbm [shape: f32[8,128], index: 2, kind: output, shape index: {}]  }
   0x1   :  { %v582_v0 = vld [vmem:[%s791_s0 + $0x10] sm:$0xff]  ;;  %v587_v1 = vld [vmem:[%s791_s0] sm:$0xff]  ;;  %v592_v2 = vld [vmem:[%s791_s0 + $0x18] sm:$0xff]  ;;  %490 = vset.pattern.permute.xlu1 %v561_v6  ;;  %489 = vset.pattern.permute.xlu0 %v561_v6 }
   0x2   :  { %v92_v3 = vsel %vm85_vm0, %v582_v0, -inf  ;;  %v86_v4 = vsel %vm85_vm0, %v587_v1, -inf  ;;  %v601_v5 = vld [vmem:[%s791_s0 + $0x8] sm:$0xff]  ;;  %v95_v7 = vsel %vm85_vm0, %v592_v2, -inf  ;;  %v615_v10 = vld [vmem:[%s791_s0 + $0x20] sm:$0xff] }
   0x3   :  { %93 = vmax.xlane.f32.xlu1 %v92_v3  ;;  %87 = vmax.xlane.f32.xlu0 %v86_v4  ;;  %v89_v8 = vsel %vm85_vm0, %v601_v5, -inf  ;;  %v610_v9 = vld [vmem:[%s791_s0 + $0x28] sm:$0xff] }
   0x4   :  { %7 = vsyncpa [#allocation4], 0  ;;  %v101_v11 = vsel %vm85_vm0, %v610_v9, -inf  ;;  %v98_v12 = vsel %vm85_vm0, %v615_v10, -inf  ;;  %v624_v13 = vld [vmem:[%s791_s0 + $0x38] sm:$0xff]  ;;  %v629_v14 = vld [vmem:[%s791_s0 + $0x30] sm:$0xff]  ;;  %v182_v54 = vlaneseq }
   0x5   :  { %v107_v15 = vsel %vm85_vm0, %v624_v13, -inf  ;;  %v104_v16 = vsel %vm85_vm0, %v629_v14, -inf  ;;  %v78_v17 = vld [vmem:[%s792_s1 + $0x8] sm:$0xff]  ;;  %v79_v18 = vld [vmem:[%s792_s1 + $0x10] sm:$0xff]  ;;  %v77_v19 = vld [vmem:[%s792_s1] sm:$0xff]  ;;  %vm60_vm9 = vcmask 7168  }
   0x6   :  { %v80_v20 = vld [vmem:[%s792_s1 + $0x18] sm:$0xff]  ;;  %v81_v21 = vld [vmem:[%s792_s1 + $0x20] sm:$0xff]  ;;  %v82_v22 = vld [vmem:[%s792_s1 + $0x28] sm:$0xff]  ;;  %v183_v61 = vand.u32 127, %v182_v54 }
   0x7   :  { %96 = vmax.xlane.f32.xlu1 %v95_v7  ;;  %90 = vmax.xlane.f32.xlu0 %v89_v8  ;;  %v83_v23 = vld [vmem:[%s792_s1 + $0x30] sm:$0xff]  ;;  %v84_v24 = vld [vmem:[%s792_s1 + $0x38] sm:$0xff]  ;;  %s563_s1 = smov [#allocation3]  }
   0x8   :  { %s448_s12 = sshll.u32 %s563_s1, 4  ;;  %s449_s12 = int_to_ptr.vmem [resolvable:$true] %s448_s12 }
   0x9   :  { %s539_s14 = scalar_lea.vmem %s449_s12, 128  ;;  %p544_p1 = scmp.lt.s32.totalorder %s449_s12, %s449_s12 }
   0xa   :  { %p540_p0 = scmp.ne.s32.totalorder %s449_s12, %s539_s14  ;;  %p545_p2 = scmp.lt.s32.totalorder %s539_s14, %s539_s14 }
   0xb   :  { %102 = vmax.xlane.f32.xlu1 %v101_v11  ;;  %99 = vmax.xlane.f32.xlu0 %v98_v12 }
   0xc   :  { %p546_p3 = por %p545_p2, %p544_p1 }
   0xe   :  { %p547_p4 = pnand %p546_p3, %p540_p0 }
   0xf   :  { %108 = vmax.xlane.f32.xlu1 %v107_v15  ;;  %105 = vmax.xlane.f32.xlu0 %v104_v16 }
  0x20   :  { %188 = vperm.xlu1 %490, %v78_v17  }
  0x24   :  { %191 = vperm.xlu1 %490, %v79_v18  }
  0x25   :  { %185 = vperm.xlu0 %489, %v77_v19  }
  0x28   :  { %194 = vperm.xlu1 %490, %v80_v20  }
  0x2c   :  { %197 = vperm.xlu1 %490, %v81_v21  }
  0x30   :  { %200 = vperm.xlu1 %490, %v82_v22  }
  0x34   :  { %203 = vperm.xlu1 %490, %v83_v23  }
  0x38   :  { %206 = vperm.xlu1 %490, %v84_v24  }
  0x8c   :  { %v659_v25 = vpop.xlane.xlu1 %93  ;;  %v661_v26 = vpop.xlane.xlu0 %87 }
  0x8d   :  { %v110_v27 = vsub.f32 %v587_v1, %v661_v26  ;;  %v112_v29 = vsub.f32 %v582_v0, %v659_v25 }
  0x8f   :  { %v118_v28 = vmul.f32 1.442695, %v110_v27  ;;  %v122_v36 = vmul.f32 1.442695, %v112_v29 }
  0x90   :  { %v667_v30 = vpop.xlane.xlu1 %96  ;;  %v669_v31 = vpop.xlane.xlu0 %90 }
  0x91   :  { %v113_v32 = vsub.f32 %v592_v2, %v667_v30  ;;  %v111_v33 = vsub.f32 %v601_v5, %v669_v31  ;;  %491 = vpow2.f32 %v118_v28 }
  0x93   :  { %v124_v34 = vmul.f32 1.442695, %v113_v32  ;;  %v120_v35 = vmul.f32 1.442695, %v111_v33 }
  0x94   :  { %v675_v37 = vpop.xlane.xlu1 %102  ;;  %v677_v38 = vpop.xlane.xlu0 %99 }
  0x95   :  { %493 = vpow2.f32 %v124_v34  ;;  %v115_v39 = vsub.f32 %v610_v9, %v675_v37  ;;  %v114_v40 = vsub.f32 %v615_v10, %v677_v38  ;;  %v562_v34 = vmov 0.0  }
  0x96   :  { %495 = vpow2.f32 %v120_v35  ;;  %62 = vst.msk [vmem:[#allocation2 + $0x8] sm:$0xff] %vm60_vm9, %v562_v34  ;;  %61 = vst.msk [vmem:[#allocation2] sm:$0xff] %vm60_vm9, %v562_v34 }
  0x97   :  { %v128_v41 = vmul.f32 1.442695, %v115_v39  ;;  %v126_v42 = vmul.f32 1.442695, %v114_v40  ;;  %497 = vpow2.f32 %v122_v36  ;;  %63 = vst.msk [vmem:[#allocation2 + $0x10] sm:$0xff] %vm60_vm9, %v562_v34  ;;  %64 = vst.msk [vmem:[#allocation2 + $0x18] sm:$0xff] %vm60_vm9, %v562_v34 }
  0x98   :  { %v683_v43 = vpop.xlane.xlu1 %108  ;;  %v685_v44 = vpop.xlane.xlu0 %105  ;;  %65 = vst.msk [vmem:[#allocation2 + $0x20] sm:$0xff] %vm60_vm9, %v562_v34  ;;  %66 = vst.msk [vmem:[#allocation2 + $0x28] sm:$0xff] %vm60_vm9, %v562_v34 }
  0x99   :  { %499 = vpow2.f32 %v128_v41  ;;  %v117_v45 = vsub.f32 %v624_v13, %v683_v43  ;;  %v116_v46 = vsub.f32 %v629_v14, %v685_v44  ;;  %67 = vst.msk [vmem:[#allocation2 + $0x30] sm:$0xff] %vm60_vm9, %v562_v34  ;;  %68 = vst.msk [vmem:[#allocation2 + $0x38] sm:$0xff] %vm60_vm9, %v562_v34 }
  0x9a   :  { %501 = vpow2.f32 %v126_v42 }
  0x9b   :  { %v132_v47 = vmul.f32 1.442695, %v117_v45  ;;  %v130_v48 = vmul.f32 1.442695, %v116_v46 }
  0x9c   :  { %v189_v49 = vpop.permute.xlu1 %188 }
  0x9d   :  { %503 = vpow2.f32 %v132_v47  ;;  %vm209_vm1 = vcmp.eq.s32.totalorder %v183_v61, %v189_v49 }
  0x9e   :  { %505 = vpow2.f32 %v130_v48  ;;  %v492_v50 = vpop.eup %491  ;;  %v217_v16 = vsel %vm209_vm1, %v601_v5, 0.0 }
  0x9f   :  { %v134_v52 = vsel %vm85_vm0, %v492_v50, 0.0  ;;  %v227_v20 = vsel %vm85_vm0, %v217_v16, 0.0 }
  0xa0   :  { %v192_v51 = vpop.permute.xlu1 %191  ;;  %135 = vadd.xlane.f32.xlu1 %v134_v52  ;;  %v186_v6 = vpop.permute.xlu0 %185 }
  0xa1   :  { %vm208_vm2 = vcmp.eq.s32.totalorder %v183_v61, %v186_v6  ;;  %vm210_vm4 = vcmp.eq.s32.totalorder %v183_v61, %v192_v51 }
  0xa2   :  { %v494_v53 = vpop.eup %493  ;;  %v216_v18 = vsel %vm208_vm2, %v587_v1, 0.0  ;;  %v218_v1 = vsel %vm210_vm4, %v582_v0, 0.0 }
  0xa3   :  { %v496_v55 = vpop.eup %495  ;;  %v143_v56 = vsel %vm85_vm0, %v494_v53, 0.0  ;;  %v224_v22 = vsel %vm85_vm0, %v216_v18, 0.0  ;;  %v230_v28 = vsel %vm85_vm0, %v218_v1, 0.0 }
  0xa4   :  { %v195_v57 = vpop.permute.xlu1 %194  ;;  %v137_v58 = vsel %vm85_vm0, %v496_v55, 0.0  ;;  %v498_v59 = vpop.eup %497  ;;  %144 = vadd.xlane.f32.xlu1 %v143_v56 }
  0xa5   :  { %138 = vadd.xlane.f32.xlu0 %v137_v58  ;;  %v140_v4 = vsel %vm85_vm0, %v498_v59, 0.0  ;;  %vm211_vm3 = vcmp.eq.s32.totalorder %v183_v61, %v195_v57 }
  0xa6   :  { %v500_v60 = vpop.eup %499  ;;  %v219_v21 = vsel %vm211_vm3, %v592_v2, 0.0 }
  0xa7   :  { %v502_v62 = vpop.eup %501  ;;  %v149_v63 = vsel %vm85_vm0, %v500_v60, 0.0  ;;  %v233_v24 = vsel %vm85_vm0, %v219_v21, 0.0 }
  0xa8   :  { %v198_v3 = vpop.permute.xlu1 %197  ;;  %150 = vadd.xlane.f32.xlu1 %v149_v63  ;;  %v146_v8 = vsel %vm85_vm0, %v502_v62, 0.0 }
  0xa9   :  { %141 = vadd.xlane.f32.xlu0 %v140_v4  ;;  %vm212_vm6 = vcmp.eq.s32.totalorder %v183_v61, %v198_v3 }
  0xaa   :  { %v504_v7 = vpop.eup %503  ;;  %v220_v29 = vsel %vm212_vm6, %v615_v10, 0.0 }
  0xab   :  { %v506_v11 = vpop.eup %505  ;;  %v155_v12 = vsel %vm85_vm0, %v504_v7, 0.0  ;;  %v236_v33 = vsel %vm85_vm0, %v220_v29, 0.0 }
  0xac   :  { %v201_v15 = vpop.permute.xlu1 %200  ;;  %156 = vadd.xlane.f32.xlu1 %v155_v12  ;;  %v152_v17 = vsel %vm85_vm0, %v506_v11, 0.0 }
  0xad   :  { %147 = vadd.xlane.f32.xlu0 %v146_v8  ;;  %vm213_vm5 = vcmp.eq.s32.totalorder %v183_v61, %v201_v15 }
  0xae   :  { %v221_v5 = vsel %vm213_vm5, %v610_v9, 0.0 }
  0xaf   :  { %v239_v27 = vsel %vm85_vm0, %v221_v5, 0.0 }
  0xb0   :  { %v204_v19 = vpop.permute.xlu1 %203  ;;  %228 = vadd.xlane.f32.xlu1 %v227_v20 }
  0xb1   :  { %153 = vadd.xlane.f32.xlu0 %v152_v17  ;;  %vm214_vm8 = vcmp.eq.s32.totalorder %v183_v61, %v204_v19 }
  0xb2   :  { %v222_v0 = vsel %vm214_vm8, %v629_v14, 0.0 }
  0xb3   :  { %v242_v9 = vsel %vm85_vm0, %v222_v0, 0.0 }
  0xb4   :  { %v207_v23 = vpop.permute.xlu1 %206  ;;  %234 = vadd.xlane.f32.xlu1 %v233_v24 }
  0xb5   :  { %225 = vadd.xlane.f32.xlu0 %v224_v22  ;;  %vm215_vm7 = vcmp.eq.s32.totalorder %v183_v61, %v207_v23 }
  0xb6   :  { %v223_v2 = vsel %vm215_vm7, %v624_v13, 0.0 }
  0xb7   :  { %v245_v32 = vsel %vm85_vm0, %v223_v2, 0.0 }
  0xb8   :  { %240 = vadd.xlane.f32.xlu1 %v239_v27 }
  0xb9   :  { %231 = vadd.xlane.f32.xlu0 %v230_v28 }
  0xbc   :  { %246 = vadd.xlane.f32.xlu1 %v245_v32 }
  0xbd   :  { %237 = vadd.xlane.f32.xlu0 %v236_v33 }
  0xc1   :  { %243 = vadd.xlane.f32.xlu0 %v242_v9 }
 0x129   :  { %v136_v10 = vpop.xlane.xlu1 %135 }
 0x12a   :  { %507 = vlog2.f32 %v136_v10 }
 0x12d   :  { %v145_v13 = vpop.xlane.xlu1 %144 }
 0x12e   :  { %v139_v14 = vpop.xlane.xlu0 %138  ;;  %509 = vlog2.f32 %v145_v13 }
 0x12f   :  { %511 = vlog2.f32 %v139_v14 }
 0x131   :  { %v151_v35 = vpop.xlane.xlu1 %150 }
 0x132   :  { %v142_v36 = vpop.xlane.xlu0 %141  ;;  %513 = vlog2.f32 %v151_v35 }
 0x133   :  { %515 = vlog2.f32 %v142_v36 }
 0x135   :  { %v157_v39 = vpop.xlane.xlu1 %156 }
 0x136   :  { %v148_v40 = vpop.xlane.xlu0 %147  ;;  %517 = vlog2.f32 %v157_v39 }
 0x137   :  { %v508_v41 = vpop.eup %507  ;;  %519 = vlog2.f32 %v148_v40 }
 0x138   :  { %v159_v42 = vmul.f32 0.6931472, %v508_v41 }
 0x139   :  { %v229_v45 = vpop.xlane.xlu1 %228 }
 0x13a   :  { %v154_v46 = vpop.xlane.xlu0 %153  ;;  %v174_v50 = vadd.f32 %v159_v42, %v661_v26 }
 0x13b   :  { %521 = vlog2.f32 %v154_v46  ;;  %v510_v47 = vpop.eup %509 }
 0x13c   :  { %v512_v48 = vpop.eup %511  ;;  %v165_v49 = vmul.f32 0.6931472, %v510_v47 }
 0x13d   :  { %v161_v51 = vmul.f32 0.6931472, %v512_v48  ;;  %v235_v52 = vpop.xlane.xlu1 %234 }
 0x13e   :  { %v226_v53 = vpop.xlane.xlu0 %225  ;;  %v177_v54 = vadd.f32 %v165_v49, %v667_v30 }
 0x13f   :  { %v248_v55 = vsub.f32 %v174_v50, %v226_v53  ;;  %v514_v56 = vpop.eup %513  ;;  %v175_v57 = vadd.f32 %v161_v51, %v669_v31 }
 0x140   :  { %v516_v58 = vpop.eup %515  ;;  %v169_v59 = vmul.f32 0.6931472, %v514_v56  ;;  %v251_v60 = vsub.f32 %v177_v54, %v235_v52  ;;  %v380_v54 = vld [vmem:[#allocation2] sm:$0xff] }
 0x141   :  { %v468_v61 = vadd.f32 -0.5, %v248_v55  ;;  %v163_v62 = vmul.f32 0.6931472, %v516_v58  ;;  %v249_v63 = vsub.f32 %v175_v57, %v229_v45  ;;  %v241_v11 = vpop.xlane.xlu1 %240 }
 0x142   :  { %v232_v3 = vpop.xlane.xlu0 %231  ;;  %v471_v4 = vadd.f32 -0.5, %v251_v60  ;;  %v179_v26 = vadd.f32 %v169_v59, %v675_v37  ;;  %v383_v60 = vld [vmem:[#allocation2 + $0x18] sm:$0xff] }
 0x143   :  { %v264_v6 = vmul.f32 %v468_v61, %v468_v61  ;;  %v518_v7 = vpop.eup %517  ;;  %v469_v8 = vadd.f32 -0.5, %v249_v63  ;;  %v176_v30 = vadd.f32 %v163_v62, %v659_v25  ;;  %v381_v62 = vld [vmem:[#allocation2 + $0x8] sm:$0xff] }
 0x144   :  { %v520_v12 = vpop.eup %519  ;;  %v267_v15 = vmul.f32 %v471_v4, %v471_v4  ;;  %v253_v31 = vsub.f32 %v179_v26, %v241_v11  ;;  %v173_v19 = vmul.f32 0.6931472, %v518_v7 }
 0x145   :  { %v272_v16 = vadd.f32 1.0, %v264_v6  ;;  %v265_v17 = vmul.f32 %v469_v8, %v469_v8  ;;  %v250_v18 = vsub.f32 %v176_v30, %v232_v3  ;;  %v167_v23 = vmul.f32 0.6931472, %v520_v12  ;;  %v247_v2 = vpop.xlane.xlu1 %246 }
 0x146   :  { %v275_v20 = vadd.f32 1.0, %v267_v15  ;;  %v238_v21 = vpop.xlane.xlu0 %237  ;;  %v473_v5 = vadd.f32 -0.5, %v253_v31  ;;  %v181_v28 = vadd.f32 %v173_v19, %v683_v43 }
 0x147   :  { %523 = vrsqrt.f32 %v272_v16  ;;  %v273_v24 = vadd.f32 1.0, %v265_v17  ;;  %v470_v37 = vadd.f32 -0.5, %v250_v18  ;;  %v178_v29 = vadd.f32 %v167_v23, %v677_v38  ;;  %v385_v17 = vld [vmem:[#allocation2 + $0x28] sm:$0xff] }
 0x148   :  { %v522_v22 = vpop.eup %521  ;;  %525 = vrsqrt.f32 %v275_v20  ;;  %v269_v27 = vmul.f32 %v473_v5, %v473_v5  ;;  %v255_v9 = vsub.f32 %v181_v28, %v247_v2  ;;  %vm282_vm10 = vcmp.eq.f32.partialorder %v272_v16, inf }
 0x149   :  { %v171_v1 = vmul.f32 0.6931472, %v522_v22  ;;  %527 = vrsqrt.f32 %v273_v24  ;;  %v266_v25 = vmul.f32 %v470_v37, %v470_v37  ;;  %v252_v10 = vsub.f32 %v178_v29, %v238_v21  ;;  %v382_v21 = vld [vmem:[#allocation2 + $0x10] sm:$0xff] }
 0x14a   :  { %v731_v33 = vadd.f32 1.0, %v269_v27  ;;  %v244_v34 = vpop.xlane.xlu0 %243  ;;  %v475_v14 = vadd.f32 -0.5, %v255_v9  ;;  %vm303_vm11 = vcmp.eq.f32.partialorder %v275_v20, inf  ;;  %vm305_vm12 = vcmp.eq.f32.partialorder %v275_v20, 0.0 }
 0x14b   :  { %v180_v32 = vadd.f32 %v171_v1, %v685_v44  ;;  %v733_v0 = vadd.f32 1.0, %v266_v25  ;;  %v472_v35 = vadd.f32 -0.5, %v252_v10  ;;  %vm284_vm13 = vcmp.eq.f32.partialorder %v272_v16, 0.0 }
 0x14c   :  { %529 = vrsqrt.f32 %v731_v33  ;;  %v271_v36 = vmul.f32 %v475_v14, %v475_v14  ;;  %v285_v46 = vand.u32 2147483648, %v272_v16  ;;  %vm289_vm14 = vcmp.eq.f32.partialorder %v273_v24, inf  ;;  %v384_v14 = vld [vmem:[#allocation2 + $0x20] sm:$0xff] }
 0x14d   :  { %v254_v13 = vsub.f32 %v180_v32, %v244_v34  ;;  %531 = vrsqrt.f32 %v733_v0  ;;  %v268_v39 = vmul.f32 %v472_v35, %v472_v35  ;;  %v306_v52 = vand.u32 2147483648, %v275_v20  ;;  %v387_v32 = vld [vmem:[#allocation2 + $0x38] sm:$0xff] }
 0x14e   :  { %v737_v41 = vadd.f32 1.0, %v271_v36  ;;  %v292_v55 = vand.u32 2147483648, %v273_v24  ;;  %vm291_vm15 = vcmp.eq.f32.partialorder %v273_v24, 0.0  ;;  %vm317_vm0 = vcmp.eq.f32.partialorder %v731_v33, inf }
 0x14f   :  { %v474_v43 = vadd.f32 -0.5, %v254_v13  ;;  %v739_v42 = vadd.f32 1.0, %v268_v39  ;;  %v320_v30 = vand.u32 2147483648, %v731_v33  ;;  %vm319_vm1 = vcmp.eq.f32.partialorder %v731_v33, 0.0 }
 0x150   :  { %533 = vrsqrt.f32 %v737_v41  ;;  %vm296_vm2 = vcmp.eq.f32.partialorder %v733_v0, inf  ;;  %vm298_vm3 = vcmp.eq.f32.partialorder %v733_v0, 0.0  ;;  %vm331_vm4 = vcmp.eq.f32.partialorder %v737_v41, inf }
 0x151   :  { %v270_v38 = vmul.f32 %v474_v43, %v474_v43  ;;  %535 = vrsqrt.f32 %v739_v42  ;;  %v334_v27 = vand.u32 2147483648, %v737_v41  ;;  %vm333_vm5 = vcmp.eq.f32.partialorder %v737_v41, 0.0 }
 0x152   :  { %vm310_vm6 = vcmp.eq.f32.partialorder %v739_v42, inf  ;;  %vm312_vm7 = vcmp.eq.f32.partialorder %v739_v42, 0.0 }
 0x153   :  { %v742_v50 = vadd.f32 1.0, %v270_v38 }
 0x154   :  { %v524_v40 = vpop.eup %523 }
 0x155   :  { %v281_v44 = vmul.f32 %v524_v40, %v272_v16  ;;  %v526_v45 = vpop.eup %525  ;;  %537 = vrsqrt.f32 %v742_v50  ;;  %vm324_vm8 = vcmp.eq.f32.partialorder %v742_v50, inf  ;;  %v327_v35 = vand.u32 2147483648, %v742_v50 }
 0x156   :  { %v528_v47 = vpop.eup %527  ;;  %v302_v48 = vmul.f32 %v526_v45, %v275_v20 }
 0x157   :  { %v283_v49 = vsel %vm282_vm10, %v272_v16, %v281_v44  ;;  %v288_v51 = vmul.f32 %v528_v47, %v273_v24  ;;  %v299_v16 = vand.u32 2147483648, %v733_v0  ;;  %vm326_vm10 = vcmp.eq.f32.partialorder %v742_v50, 0.0 }
 0x158   :  { %v286_v53 = vsel %vm284_vm13, %v285_v46, %v283_v49  ;;  %v304_v56 = vsel %vm303_vm11, %v275_v20, %v302_v48 }
 0x159   :  { %v476_v57 = vadd.f32 -1.0, %v286_v53  ;;  %v290_v58 = vsel %vm289_vm14, %v273_v24, %v288_v51  ;;  %v307_v59 = vsel %vm305_vm12, %v306_v52, %v304_v56  ;;  %v530_v4 = vpop.eup %529 }
 0x15a   :  { %v293_v61 = vsel %vm291_vm15, %v292_v55, %v290_v58  ;;  %v479_v63 = vadd.f32 -1.0, %v307_v59  ;;  %v532_v26 = vpop.eup %531  ;;  %v316_v8 = vmul.f32 %v530_v4, %v731_v33 }
 0x15b   :  { %v388_v3 = vadd.f32 %v476_v57, %v380_v54  ;;  %v477_v6 = vadd.f32 -1.0, %v293_v61  ;;  %v295_v12 = vmul.f32 %v532_v26, %v733_v0 }
 0x15c   :  { %v391_v7 = vadd.f32 %v479_v63, %v383_v60  ;;  %v318_v15 = vsel %vm317_vm0, %v731_v33, %v316_v8  ;;  %v313_v33 = vand.u32 2147483648, %v739_v42 }
 0x15d   :  { %397 = vst.msk [vmem:[#allocation2] sm:$0xff] %vm60_vm9, %v388_v3  ;;  %v389_v11 = vadd.f32 %v477_v6, %v381_v62  ;;  %v321_v31 = vsel %vm319_vm1, %v320_v30, %v318_v15  ;;  %v297_v18 = vsel %vm296_vm2, %v733_v0, %v295_v12  ;;  %v534_v24 = vpop.eup %533 }
 0x15e   :  { %400 = vst.msk [vmem:[#allocation2 + $0x18] sm:$0xff] %vm60_vm9, %v391_v7  ;;  %v481_v19 = vadd.f32 -1.0, %v321_v31  ;;  %v300_v20 = vsel %vm298_vm3, %v299_v16, %v297_v18  ;;  %v330_v37 = vmul.f32 %v534_v24, %v737_v41  ;;  %v536_v1 = vpop.eup %535 }
 0x15f   :  { %398 = vst.msk [vmem:[#allocation2 + $0x8] sm:$0xff] %vm60_vm9, %v389_v11  ;;  %v478_v22 = vadd.f32 -1.0, %v300_v20  ;;  %v309_v28 = vmul.f32 %v536_v1, %v739_v42 }
 0x160   :  { %v393_v23 = vadd.f32 %v481_v19, %v385_v17  ;;  %v332_v25 = vsel %vm331_vm4, %v737_v41, %v330_v37  ;;  %v386_v41 = vld [vmem:[#allocation2 + $0x30] sm:$0xff] }
 0x161   :  { %v390_v5 = vadd.f32 %v478_v22, %v382_v21  ;;  %v335_v29 = vsel %vm333_vm5, %v334_v27, %v332_v25  ;;  %v311_v34 = vsel %vm310_vm6, %v739_v42, %v309_v28 }
 0x162   :  { %402 = vst.msk [vmem:[#allocation2 + $0x28] sm:$0xff] %vm60_vm9, %v393_v23  ;;  %v538_v2 = vpop.eup %537  ;;  %v483_v9 = vadd.f32 -1.0, %v335_v29  ;;  %v314_v13 = vsel %vm312_vm7, %v313_v33, %v311_v34 }
 0x163   :  { %399 = vst.msk [vmem:[#allocation2 + $0x10] sm:$0xff] %vm60_vm9, %v390_v5  ;;  %v323_v10 = vmul.f32 %v538_v2, %v742_v50  ;;  %v480_v39 = vadd.f32 -1.0, %v314_v13 }
 0x164   :  { %v408_v43 = vld [vmem:[#allocation2] sm:$0xff]  ;;  %v395_v36 = vadd.f32 %v483_v9, %v387_v32 }
 0x165   :  { %v325_v38 = vsel %vm324_vm8, %v742_v50, %v323_v10  ;;  %v392_v42 = vadd.f32 %v480_v39, %v384_v14  ;;  %v416_v47 = vsel %vm60_vm9, %v408_v43, 0.0  ;;  %v411_v52 = vld [vmem:[#allocation2 + $0x18] sm:$0xff] }
 0x166   :  { %v409_v0 = vld [vmem:[#allocation2 + $0x8] sm:$0xff]  ;;  %v328_v44 = vsel %vm326_vm10, %v327_v35, %v325_v38  ;;  %404 = vst.msk [vmem:[#allocation2 + $0x38] sm:$0xff] %vm60_vm9, %v395_v36  ;;  %v421_v50 = vsel %vm60_vm9, %v411_v52, 0.0 }
 0x167   :  { %v417_v40 = vsel %vm60_vm9, %v409_v0, 0.0  ;;  %v482_v45 = vadd.f32 -1.0, %v328_v44  ;;  %401 = vst.msk [vmem:[#allocation2 + $0x20] sm:$0xff] %vm60_vm9, %v392_v42 }
 0x168   :  { %v418_v48 = vadd.f32 %v417_v40, %v416_v47 }
 0x169   :  { %v394_v51 = vadd.f32 %v482_v45, %v386_v41  ;;  %v413_v56 = vld [vmem:[#allocation2 + $0x28] sm:$0xff] }
 0x16a   :  { %v410_v46 = vld [vmem:[#allocation2 + $0x10] sm:$0xff]  ;;  %v425_v60 = vsel %vm60_vm9, %v413_v56, 0.0 }
 0x16b   :  { %v419_v49 = vsel %vm60_vm9, %v410_v46, 0.0  ;;  %403 = vst.msk [vmem:[#allocation2 + $0x30] sm:$0xff] %vm60_vm9, %v394_v51 }
 0x16c   :  { %v420_v53 = vadd.f32 %v419_v49, %v418_v48 }
 0x16d   :  { %v415_v62 = vld [vmem:[#allocation2 + $0x38] sm:$0xff] }
 0x16e   :  { %v422_v54 = vadd.f32 %v421_v50, %v420_v53  ;;  %v412_v55 = vld [vmem:[#allocation2 + $0x20] sm:$0xff]  ;;  %v429_v4 = vsel %vm60_vm9, %v415_v62, 0.0 }
 0x16f   :  { %v423_v57 = vsel %vm60_vm9, %v412_v55, 0.0 }
 0x170   :  { %v424_v59 = vadd.f32 %v423_v57, %v422_v54 }
 0x172   :  { %v414_v58 = vld [vmem:[#allocation2 + $0x30] sm:$0xff]  ;;  %v426_v63 = vadd.f32 %v425_v60, %v424_v59 }
 0x173   :  { %v427_v61 = vsel %vm60_vm9, %v414_v58, 0.0 }
 0x174   :  { %v428_v3 = vadd.f32 %v427_v61, %v426_v63 }
 0x176   :  { %v430_v6 = vadd.f32 %v429_v4, %v428_v3 }
 0x178   :  { %431 = vadd.xlane.f32.xlu0 %v430_v6 }
 0x201   :  { %v432_v26 = vpop.xlane.xlu0 %431 }
 0x202   :  { %v433_v7 = vrot.slane %v432_v26, 4 }
 0x204   :  { %v434_v8 = vadd.f32 %v433_v7, %v432_v26 }
 0x206   :  { %v435_v11 = vrot.slane %v434_v8, 2 }
 0x208   :  { %v436_v30 = vadd.f32 %v435_v11, %v434_v8 }
 0x20a   :  { %v437_v12 = vrot.slane %v436_v30, 1 }
 0x20c   :  { %v438_v15 = vadd.f32 %v437_v12, %v436_v30 }
 0x20e   :  { %484 = vpush %v438_v15 }
 0x23f   :  { %s485_s13 = spop %484 }
 0x240   :  { %v440_v16 = vstv %s485_s13 }
 0x241   :  { %441 = vst [vmem:[#allocation3] sm:$0xff] %v440_v16 }
 0x242   :  { %550 = shalt.err (!%p547_p4)
}
 0x243   :  { %451 = dma.vmem_to_hbm [thread:$0]  %s449_s12, 128, %s793_s2, [#allocation4]  }
 0x244   :  { %559 = dma.done.wait [#allocation4], 128  }
 0x245   :  { %560 = vsyncadd [#allocation4], 4294967168 }
 0x246   :  { %455 = vsyncpa [#allocation4], 1 }

</bundles_post_ra>
